<compile_context>
chip_gen: v5e
topology: v5e:2x2
jax: 0.10.0
libtpu: 0.0.40
codegen_flags: <defaults>
</compile_context>

<pallas_src>
import jax
import jax.numpy as jnp
from jax.experimental import pallas as pl
from jax.experimental.pallas import tpu as pltpu


# ------------------------------- Pallas kernel -------------------------------

def _make_kernel(kc, hw_blk):
    """kc = whole channels per block (1 when tiling inside a channel);
    hw_blk = spatial columns per channel inside one block (TF == kc * hw_blk)."""

    def kernel(h_ref, w2_ref, b2_ref, x_ref, o_ref, add_ref):
        # conv2 (+ ReLU) restricted to this block's columns: MXU matmul.
        mm = jnp.dot(h_ref[...], w2_ref[...],
                     preferred_element_type=jnp.float32)
        mm = jnp.maximum(mm + b2_ref[...], 0.0)             # (N, TF)

        # The first channel(-block) visited per spatial tile holds channel C-1;
        # stash its columns -> additive term reused for the whole tile.
        @pl.when(pl.program_id(1) == 0)
        def _():
            add_ref[...] = mm[:, (kc - 1) * hw_blk:]

        add = add_ref[...]                                   # (N, hw_blk)
        if kc > 1:
            add = jnp.concatenate([add] * kc, axis=-1)       # (N, TF)

        # out = g[:, :-1] * x + g[:, -2:-1]   (flat channel-major layout)
        o_ref[...] = mm * x_ref[...] + add

    return kernel


# --------------------------------- tiling ------------------------------------

def _pick_tile(c, hw, max_block_bytes=8 << 20, bytes_per_el=4):
    """Choose the flat-column tile.

    Returns (tf, num_sp, num_cblk, kc, hw_blk) with tf = kc * hw_blk and
    grid = (num_sp, num_cblk); num_sp * num_cblk * tf == c * hw."""
    max_tf = max(128, max_block_bytes // (64 * bytes_per_el))
    if hw <= max_tf:
        # Flat tiling: each block spans kc whole channels.
        kc = 1
        for d in range(1, c + 1):
            if c % d == 0 and d * hw <= max_tf:
                kc = d
        return kc * hw, 1, c // kc, kc, hw
    # Large spatial extent: tile inside one channel (tf divides hw).
    tf = 128
    t = 128
    while t <= max_tf:
        if hw % t == 0:
            tf = t
        t += 128
    return tf, hw // tf, c, 1, tf


# --------------------------------- wrapper -----------------------------------

def multiplicative_filter(x, angle, prepared_params):
    """x: (N, C, H, W) f32, angle: (N, 2, 1, 1) f32 -> (N, C, H, W) f32."""
    n, c, h, w = x.shape
    hw = h * w
    chw = c * hw
    if angle.shape != (n, 2, 1, 1):
        # TODO(synk): general angle spatial dims (reference .view() only supports 1x1 anyway).
        raise NotImplementedError("angle must be (N, 2, 1, 1)")
    if hw % 128 != 0:
        # TODO(synk): lane-tail masking for H*W not a multiple of 128.
        raise NotImplementedError("H*W must be a multiple of 128")

    w1, b1, w2m, b2m = prepared_params
    assert w2m.shape == (64, chw) and b2m.shape == (1, chw)

    # Tiny conv1 (2 -> 64) + ReLU: plain JAX; pass h as one resident block.
    a = angle.reshape(n, 2).astype(jnp.float32)
    hvec = jnp.maximum(a @ w1 + b1, 0.0)                     # (N, 64)

    tf, num_sp, num_cblk, kc, hw_blk = _pick_tile(c, hw)

    def cols(pi, ci):
        # Channel(-block) axis permuted so ci == 0 is the block holding channel
        # C-1 (the additive-bias channel); it fills the scratch for this tile.
        return (0, ((ci + num_cblk - 1) % num_cblk) * num_sp + pi)

    def resident(pi, ci):
        return (0, 0)

    out_flat = pl.pallas_call(
        _make_kernel(kc, hw_blk),
        out_shape=jax.ShapeDtypeStruct((n, chw), jnp.float32),
        grid=(num_sp, num_cblk),
        in_specs=[
            pl.BlockSpec((n, 64), resident),       # h = ReLU(conv1(angle))
            pl.BlockSpec((64, tf), cols),          # conv2 weight columns
            pl.BlockSpec((1, tf), cols),           # conv2 bias columns
            pl.BlockSpec((n, tf), cols),           # x columns
        ],
        out_specs=pl.BlockSpec((n, tf), cols),
        scratch_shapes=[pltpu.VMEM((n, hw_blk), jnp.float32)],
        compiler_params=pltpu.CompilerParams(
            dimension_semantics=("parallel", "arbitrary"),
            vmem_limit_bytes=32 * 1024 * 1024),
    )(hvec, w2m, b2m, x.reshape(n, chw).astype(jnp.float32))

    return out_flat.reshape(n, c, h, w)


# ------------------------------- parameters ----------------------------------

def init_torch_params(key, num_channels, h, w):
    """Random parameters in the PyTorch Conv2d layouts (weight OIHW, bias O)."""
    c = num_channels
    hw = h * w
    k1, k2, k3, k4 = jax.random.split(key, 4)
    w1 = 0.5 * jax.random.normal(k1, (64, 2, 1, 1), jnp.float32)
    b1 = 0.1 * jax.random.normal(k2, (64,), jnp.float32)
    w2 = 0.02 * jax.random.normal(k3, ((c + 1) * hw, 64, 1, 1), jnp.float32)
    b2 = 0.1 * jax.random.normal(k4, ((c + 1) * hw,), jnp.float32)
    return w1, b1, w2, b2


def prepare_params(torch_params, num_channels, h, w):
    """One-time relayout of the PyTorch weights into the kernel layout."""
    w1, b1, w2, b2 = torch_params
    c = num_channels
    hw = h * w
    w1m = jnp.transpose(w1.reshape(64, 2))                        # (2, 64)
    b1m = b1.reshape(1, 64)
    # Drop the dead conv2 channel C (never read by the reference forward).
    w2m = jnp.transpose(w2.reshape((c + 1) * hw, 64)[: c * hw])   # (64, C*H*W)
    b2m = b2[: c * hw].reshape(1, c * hw)
    return w1m, b1m, w2m, b2m


# --------------------------- pure-JAX reference -------------------------------

def reference_forward(x, angle, torch_params):
    """Direct transcription of MultiplicativeFilter.forward for checking."""
    w1, b1, w2, b2 = torch_params
    n, c, h, w = x.shape
    a = angle.reshape(n, 2)
    hdd = jnp.maximum(a @ w1.reshape(64, 2).T + b1, 0.0)
    g = jnp.maximum(hdd @ w2.reshape((c + 1) * h * w, 64).T + b2, 0.0)
    g = g.reshape(n, c + 1, h, w)
    return g[:, :-1] * x + g[:, -2:-1]


# ----------------------------------- main -------------------------------------

if __name__ == "__main__":
    key = jax.random.PRNGKey(0)
    kp, kx, ka = jax.random.split(key, 3)

    N, C, H, W = 2, 4, 16, 16
    torch_params = init_torch_params(kp, C, H, W)
    params = prepare_params(torch_params, C, H, W)

    x = jax.random.normal(kx, (N, C, H, W), jnp.float32)
    angle = jax.random.normal(ka, (N, 2, 1, 1), jnp.float32)

    fwd = jax.jit(lambda xx, aa: multiplicative_filter(xx, aa, params))
    out = jax.block_until_ready(fwd(x, angle))
    assert out.shape == (N, C, H, W)

    ref = reference_forward(x, angle, torch_params)
    err = float(jnp.max(jnp.abs(out - ref)))
    assert err < 5e-2, f"mismatch vs reference: {err}"
    print("KERNEL_OK")
</pallas_src>

<mosaic_0001>
module attributes {stable_mosaic.version = 11 : i64} {
  func.func @kernel(%arg0: i32, %arg1: i32, %arg2: memref<2x64xf32, #tpu.memory_space<vmem>>, %arg3: memref<64x1024xf32, #tpu.memory_space<vmem>>, %arg4: memref<1x1024xf32, #tpu.memory_space<vmem>>, %arg5: memref<2x1024xf32, #tpu.memory_space<vmem>>, %arg6: memref<2x1024xf32, #tpu.memory_space<vmem>>, %arg7: memref<2x256xf32, #tpu.memory_space<vmem>>) attributes {dimension_semantics = [#tpu.dimension_semantics<parallel>, #tpu.dimension_semantics<arbitrary>], iteration_bounds = array<i64: 1, 1>, scalar_prefetch = 0 : i64, scratch_operands = 1 : i64, tpu.core_type = #tpu.core_type<tc>, window_params = [{pipeline_mode = #tpu.pipeline_mode<synchronous>, transform_indices = @transform_0, window_bounds = array<i64: 2, 64>}, {transform_indices = @transform_1, window_bounds = array<i64: 64, 1024>}, {transform_indices = @transform_2, window_bounds = array<i64: 1, 1024>}, {transform_indices = @transform_3, window_bounds = array<i64: 2, 1024>}, {transform_indices = @transform_4, window_bounds = array<i64: 2, 1024>}]} {
    %c0 = arith.constant 0 : index
    %c0_0 = arith.constant 0 : index
    %0 = vector.load %arg2[%c0, %c0_0] : memref<2x64xf32, #tpu.memory_space<vmem>>, vector<2x64xf32>
    %c0_1 = arith.constant 0 : index
    %c0_2 = arith.constant 0 : index
    %1 = vector.load %arg3[%c0_1, %c0_2] : memref<64x1024xf32, #tpu.memory_space<vmem>>, vector<64x1024xf32>
    %cst = arith.constant dense<0.000000e+00> : vector<2x1024xf32>
    %2 = tpu.matmul %0, %1, %cst {dimension_numbers = #tpu.dot_dimension_numbers<[1], [0], [0], [1], [0, 0, 1, 1], [], []>} : vector<2x64xf32>, vector<64x1024xf32>, vector<2x1024xf32> -> vector<2x1024xf32>
    %c0_3 = arith.constant 0 : index
    %c0_4 = arith.constant 0 : index
    %3 = vector.load %arg4[%c0_3, %c0_4] : memref<1x1024xf32, #tpu.memory_space<vmem>>, vector<1x1024xf32>
    %4 = vector.broadcast %3 : vector<1x1024xf32> to vector<2x1024xf32>
    %5 = arith.addf %2, %4 : vector<2x1024xf32>
    %cst_5 = arith.constant 0.000000e+00 : f32
    %6 = vector.broadcast %cst_5 : f32 to vector<2x1024xf32>
    %7 = arith.maximumf %5, %6 : vector<2x1024xf32>
    %c0_i32 = arith.constant 0 : i32
    %8 = arith.cmpi eq, %arg1, %c0_i32 : i32
    %9 = arith.extui %8 : i1 to i32
    %c0_i32_6 = arith.constant 0 : i32
    %10 = arith.cmpi ne, %9, %c0_i32_6 : i32
    scf.if %10 {
      %17 = vector.extract_strided_slice %7 {offsets = [0, 768], sizes = [2, 256], strides = [1, 1]} : vector<2x1024xf32> to vector<2x256xf32>
      %c0_13 = arith.constant 0 : index
      %c0_14 = arith.constant 0 : index
      %18 = vector.load %arg7[%c0_13, %c0_14] : memref<2x256xf32, #tpu.memory_space<vmem>>, vector<2x256xf32>
      tpu.vector_store %arg7[%c0_13, %c0_14], %17 {strides = array<i32>} : memref<2x256xf32, #tpu.memory_space<vmem>>, vector<2x256xf32>,
    } else {
    }
    %c0_7 = arith.constant 0 : index
    %c0_8 = arith.constant 0 : index
    %11 = vector.load %arg7[%c0_7, %c0_8] : memref<2x256xf32, #tpu.memory_space<vmem>>, vector<2x256xf32>
    %12 = tpu.concatenate %11, %11, %11, %11 in 1 : vector<2x256xf32>, vector<2x256xf32>, vector<2x256xf32>, vector<2x256xf32> -> vector<2x1024xf32>
    %c0_9 = arith.constant 0 : index
    %c0_10 = arith.constant 0 : index
    %13 = vector.load %arg5[%c0_9, %c0_10] : memref<2x1024xf32, #tpu.memory_space<vmem>>, vector<2x1024xf32>
    %14 = arith.mulf %7, %13 : vector<2x1024xf32>
    %15 = arith.addf %14, %12 : vector<2x1024xf32>
    %c0_11 = arith.constant 0 : index
    %c0_12 = arith.constant 0 : index
    %16 = vector.load %arg6[%c0_11, %c0_12] : memref<2x1024xf32, #tpu.memory_space<vmem>>, vector<2x1024xf32>
    tpu.vector_store %arg6[%c0_11, %c0_12], %15 {strides = array<i32>} : memref<2x1024xf32, #tpu.memory_space<vmem>>, vector<2x1024xf32>,
    return
  }
  func.func @transform_0(%arg0: i32, %arg1: i32) -> (i32, i32) {
    %c0_i32 = arith.constant 0 : i32
    %c0_i32_0 = arith.constant 0 : i32
    %c0_i32_1 = arith.constant 0 : i32
    return %c0_i32, %c0_i32_0 : i32, i32
  }
  func.func @transform_1(%arg0: i32, %arg1: i32) -> (i32, i32) {
    %c1_i32 = arith.constant 1 : i32
    %0 = arith.addi %arg1, %c1_i32 : i32
    %c1_i32_0 = arith.constant 1 : i32
    %1 = arith.subi %0, %c1_i32_0 : i32
    %c1_i32_1 = arith.constant 1 : i32
    %c0_i32 = arith.constant 0 : i32
    %2 = arith.cmpi eq, %c1_i32_1, %c0_i32 : i32
    %c1_i32_2 = arith.constant 1 : i32
    %3 = arith.select %2, %c1_i32_2, %c1_i32_1 : i32
    %4 = arith.remsi %1, %3 : i32
    %c0_i32_3 = arith.constant 0 : i32
    %5 = arith.cmpi ne, %4, %c0_i32_3 : i32
    %c0_i32_4 = arith.constant 0 : i32
    %6 = arith.cmpi slt, %4, %c0_i32_4 : i32
    %c0_i32_5 = arith.constant 0 : i32
    %7 = arith.cmpi slt, %3, %c0_i32_5 : i32
    %8 = arith.xori %6, %7 : i1
    %9 = arith.andi %8, %5 : i1
    %10 = arith.addi %4, %3 : i32
    %11 = arith.select %9, %10, %4 : i32
    %c1_i32_6 = arith.constant 1 : i32
    %12 = arith.muli %11, %c1_i32_6 : i32
    %13 = arith.addi %12, %arg0 : i32
    %c0_i32_7 = arith.constant 0 : i32
    %c0_i32_8 = arith.constant 0 : i32
    return %c0_i32_7, %13 : i32, i32
  }
  func.func @transform_2(%arg0: i32, %arg1: i32) -> (i32, i32) {
    %c1_i32 = arith.constant 1 : i32
    %0 = arith.addi %arg1, %c1_i32 : i32
    %c1_i32_0 = arith.constant 1 : i32
    %1 = arith.subi %0, %c1_i32_0 : i32
    %c1_i32_1 = arith.constant 1 : i32
    %c0_i32 = arith.constant 0 : i32
    %2 = arith.cmpi eq, %c1_i32_1, %c0_i32 : i32
    %c1_i32_2 = arith.constant 1 : i32
    %3 = arith.select %2, %c1_i32_2, %c1_i32_1 : i32
    %4 = arith.remsi %1, %3 : i32
    %c0_i32_3 = arith.constant 0 : i32
    %5 = arith.cmpi ne, %4, %c0_i32_3 : i32
    %c0_i32_4 = arith.constant 0 : i32
    %6 = arith.cmpi slt, %4, %c0_i32_4 : i32
    %c0_i32_5 = arith.constant 0 : i32
    %7 = arith.cmpi slt, %3, %c0_i32_5 : i32
    %8 = arith.xori %6, %7 : i1
    %9 = arith.andi %8, %5 : i1
    %10 = arith.addi %4, %3 : i32
    %11 = arith.select %9, %10, %4 : i32
    %c1_i32_6 = arith.constant 1 : i32
    %12 = arith.muli %11, %c1_i32_6 : i32
    %13 = arith.addi %12, %arg0 : i32
    %c0_i32_7 = arith.constant 0 : i32
    %c0_i32_8 = arith.constant 0 : i32
    return %c0_i32_7, %13 : i32, i32
  }
  func.func @transform_3(%arg0: i32, %arg1: i32) -> (i32, i32) {
    %c1_i32 = arith.constant 1 : i32
    %0 = arith.addi %arg1, %c1_i32 : i32
    %c1_i32_0 = arith.constant 1 : i32
    %1 = arith.subi %0, %c1_i32_0 : i32
    %c1_i32_1 = arith.constant 1 : i32
    %c0_i32 = arith.constant 0 : i32
    %2 = arith.cmpi eq, %c1_i32_1, %c0_i32 : i32
    %c1_i32_2 = arith.constant 1 : i32
    %3 = arith.select %2, %c1_i32_2, %c1_i32_1 : i32
    %4 = arith.remsi %1, %3 : i32
    %c0_i32_3 = arith.constant 0 : i32
    %5 = arith.cmpi ne, %4, %c0_i32_3 : i32
    %c0_i32_4 = arith.constant 0 : i32
    %6 = arith.cmpi slt, %4, %c0_i32_4 : i32
    %c0_i32_5 = arith.constant 0 : i32
    %7 = arith.cmpi slt, %3, %c0_i32_5 : i32
    %8 = arith.xori %6, %7 : i1
    %9 = arith.andi %8, %5 : i1
    %10 = arith.addi %4, %3 : i32
    %11 = arith.select %9, %10, %4 : i32
    %c1_i32_6 = arith.constant 1 : i32
    %12 = arith.muli %11, %c1_i32_6 : i32
    %13 = arith.addi %12, %arg0 : i32
    %c0_i32_7 = arith.constant 0 : i32
    %c0_i32_8 = arith.constant 0 : i32
    return %c0_i32_7, %13 : i32, i32
  }
  func.func @transform_4(%arg0: i32, %arg1: i32) -> (i32, i32) {
    %c1_i32 = arith.constant 1 : i32
    %0 = arith.addi %arg1, %c1_i32 : i32
    %c1_i32_0 = arith.constant 1 : i32
    %1 = arith.subi %0, %c1_i32_0 : i32
    %c1_i32_1 = arith.constant 1 : i32
    %c0_i32 = arith.constant 0 : i32
    %2 = arith.cmpi eq, %c1_i32_1, %c0_i32 : i32
    %c1_i32_2 = arith.constant 1 : i32
    %3 = arith.select %2, %c1_i32_2, %c1_i32_1 : i32
    %4 = arith.remsi %1, %3 : i32
    %c0_i32_3 = arith.constant 0 : i32
    %5 = arith.cmpi ne, %4, %c0_i32_3 : i32
    %c0_i32_4 = arith.constant 0 : i32
    %6 = arith.cmpi slt, %4, %c0_i32_4 : i32
    %c0_i32_5 = arith.constant 0 : i32
    %7 = arith.cmpi slt, %3, %c0_i32_5 : i32
    %8 = arith.xori %6, %7 : i1
    %9 = arith.andi %8, %5 : i1
    %10 = arith.addi %4, %3 : i32
    %11 = arith.select %9, %10, %4 : i32
    %c1_i32_6 = arith.constant 1 : i32
    %12 = arith.muli %11, %c1_i32_6 : i32
    %13 = arith.addi %12, %arg0 : i32
    %c0_i32_7 = arith.constant 0 : i32
    %c0_i32_8 = arith.constant 0 : i32
    return %c0_i32_7, %13 : i32, i32
  }
}

</mosaic_0001>

<bundles_post_ra>
// kernel: _lambda_.1
= control target key start
LH: loop header
LB: loop body
LE: loop exit
PB: predicated region body
PF: predicated region fallthrough
CT: control target
= control target key end

     0   :  { %9 = vsyncpa [#allocation4], 0  ;;  %s429_s18 = smov [#allocation3]   ;;  %s430_s20 = smov 1024   ;;  %s506_s0 = inlined_call_operand.vmem [shape: f32[2,64], index: 0, kind: input, shape index: {}]   ;;  %s507_s1 = inlined_call_operand.hbm [shape: f32[64,1024], index: 1, kind: input, shape index: {}]   ;;  %s508_s2 = inlined_call_operand.vmem [shape: f32[1,1024], index: 2, kind: input, shape index: {}]   ;;  %s509_s3 = inlined_call_operand.vmem [shape: f32[2,1024], index: 3, kind: input, shape index: {}]   ;;  %s510_s4 = inlined_call_operand.vmem [shape: f32[2,1024], index: 4, kind: output, shape index: {}]  }
   0x1   :  { %s16_s17 = sshll.u32 %s507_s1, 4  ;;  %s18_s19 = sshll.u32 %s429_s18, 4  ;;  %s17_s17 = int_to_ptr.hbm [resolvable:$true] %s16_s17  ;;  %s19_s19 = int_to_ptr.vmem [resolvable:$true] %s18_s19 }
   0x2   :  { %s431_s21 = smov 64  }
   0x3   :  { %24 = dma.hbm_to_vmem [thread:$0]  %s17_s17, 8192, %s19_s19, [#allocation4], %s430_s20, %s430_s20, %s431_s21  }
   0x4   :  { %427 = dma.done.wait [#allocation4], 8192  }
   0x5   :  { %428 = vsyncadd [#allocation4], 4294959104  ;;  %v93_v0 = vld [vmem:[#allocation3 + $0x1d8] sm:$0xff]  ;;  %v92_v1 = vld [vmem:[#allocation3 + $0x1d0] sm:$0xff]  ;;  %vm116_vm0 = vcmask 523264   ;;  %vm295_vm1 = vcmask 1041408  }
   0x6   :  { %v85_v2 = vld [vmem:[#allocation3 + $0x198] sm:$0xff]  ;;  %188 = vmatpush.msra.mxu3 %v93_v0  ;;  %168 = vmatpush.msra.mxu2 %v92_v1  ;;  %v84_v3 = vld [vmem:[#allocation3 + $0x190] sm:$0xff]  ;;  %v90_v14 = vld [vmem:[#allocation3 + $0x1c0] sm:$0xff]  ;;  %vm376_vm2 = vcmask 1045508   ;;  %vm378_vm3 = vcmask 1043456  }
   0x7   :  { %v77_v4 = vld [vmem:[#allocation3 + $0x158] sm:$0xff]  ;;  %v76_v5 = vld [vmem:[#allocation3 + $0x150] sm:$0xff]  ;;  %v91_v15 = vld [vmem:[#allocation3 + $0x1c8] sm:$0xff]  ;;  %128 = vmatpush.msra.mxu0 %v90_v14 }
   0x8   :  { %189 = vmatpush.msra.mxu3 %v85_v2  ;;  %169 = vmatpush.msra.mxu2 %v84_v3  ;;  %v69_v6 = vld [vmem:[#allocation3 + $0x118] sm:$0xff]  ;;  %v68_v7 = vld [vmem:[#allocation3 + $0x110] sm:$0xff]  ;;  %v82_v16 = vld [vmem:[#allocation3 + $0x180] sm:$0xff] }
   0x9   :  { %v61_v8 = vld [vmem:[#allocation3 + $0xd8] sm:$0xff]  ;;  %v60_v9 = vld [vmem:[#allocation3 + $0xd0] sm:$0xff]  ;;  %148 = vmatpush.msra.mxu1 %v91_v15  ;;  %v83_v19 = vld [vmem:[#allocation3 + $0x188] sm:$0xff]  ;;  %129 = vmatpush.msra.mxu0 %v82_v16 }
   0xa   :  { %190 = vmatpush.msra.mxu3 %v77_v4  ;;  %170 = vmatpush.msra.mxu2 %v76_v5  ;;  %v53_v10 = vld [vmem:[#allocation3 + $0x98] sm:$0xff]  ;;  %v52_v11 = vld [vmem:[#allocation3 + $0x90] sm:$0xff]  ;;  %v74_v25 = vld [vmem:[#allocation3 + $0x140] sm:$0xff] }
   0xb   :  { %v45_v12 = vld [vmem:[#allocation3 + $0x58] sm:$0xff]  ;;  %v44_v13 = vld [vmem:[#allocation3 + $0x50] sm:$0xff]  ;;  %149 = vmatpush.msra.mxu1 %v83_v19  ;;  %v75_v26 = vld [vmem:[#allocation3 + $0x148] sm:$0xff]  ;;  %130 = vmatpush.msra.mxu0 %v74_v25 }
   0xc   :  { %191 = vmatpush.msra.mxu3 %v69_v6  ;;  %171 = vmatpush.msra.mxu2 %v68_v7  ;;  %v37_v17 = vld [vmem:[#allocation3 + $0x18] sm:$0xff]  ;;  %v36_v18 = vld [vmem:[#allocation3 + $0x10] sm:$0xff]  ;;  %v66_v29 = vld [vmem:[#allocation3 + $0x100] sm:$0xff] }
   0xd   :  { %v97_v20 = vld [vmem:[#allocation3 + $0x1f8] sm:$0xff]  ;;  %v96_v21 = vld [vmem:[#allocation3 + $0x1f0] sm:$0xff]  ;;  %v67_v30 = vld [vmem:[#allocation3 + $0x108] sm:$0xff]  ;;  %150 = vmatpush.msra.mxu1 %v75_v26  ;;  %131 = vmatpush.msra.mxu0 %v66_v29 }
   0xe   :  { %192 = vmatpush.msra.mxu3 %v61_v8  ;;  %172 = vmatpush.msra.mxu2 %v60_v9  ;;  %v463_v22 = vld [vmem:[%s506_s0] sm:$0x3]  ;;  %v89_v23 = vld [vmem:[#allocation3 + $0x1b8] sm:$0xff]  ;;  %v58_v33 = vld [vmem:[#allocation3 + $0xc0] sm:$0xff] }
   0xf   :  { %v88_v24 = vld [vmem:[#allocation3 + $0x1b0] sm:$0xff]  ;;  %v81_v27 = vld [vmem:[#allocation3 + $0x178] sm:$0xff]  ;;  %v59_v34 = vld [vmem:[#allocation3 + $0xc8] sm:$0xff]  ;;  %151 = vmatpush.msra.mxu1 %v67_v30  ;;  %132 = vmatpush.msra.mxu0 %v58_v33 }
  0x10   :  { %193 = vmatpush.msra.mxu3 %v53_v10  ;;  %173 = vmatpush.msra.mxu2 %v52_v11  ;;  %v80_v28 = vld [vmem:[#allocation3 + $0x170] sm:$0xff]  ;;  %v73_v31 = vld [vmem:[#allocation3 + $0x138] sm:$0xff]  ;;  %v50_v37 = vld [vmem:[#allocation3 + $0x80] sm:$0xff] }
  0x11   :  { %v72_v32 = vld [vmem:[#allocation3 + $0x130] sm:$0xff]  ;;  %v65_v35 = vld [vmem:[#allocation3 + $0xf8] sm:$0xff]  ;;  %v51_v38 = vld [vmem:[#allocation3 + $0x88] sm:$0xff]  ;;  %152 = vmatpush.msra.mxu1 %v59_v34  ;;  %133 = vmatpush.msra.mxu0 %v50_v37 }
  0x12   :  { %194 = vmatpush.msra.mxu3 %v45_v12  ;;  %174 = vmatpush.msra.mxu2 %v44_v13  ;;  %v64_v36 = vld [vmem:[#allocation3 + $0xf0] sm:$0xff]  ;;  %v57_v39 = vld [vmem:[#allocation3 + $0xb8] sm:$0xff]  ;;  %v42_v41 = vld [vmem:[#allocation3 + $0x40] sm:$0xff] }
  0x13   :  { %v56_v40 = vld [vmem:[#allocation3 + $0xb0] sm:$0xff]  ;;  %v43_v42 = vld [vmem:[#allocation3 + $0x48] sm:$0xff]  ;;  %v49_v43 = vld [vmem:[#allocation3 + $0x78] sm:$0xff]  ;;  %153 = vmatpush.msra.mxu1 %v51_v38  ;;  %134 = vmatpush.msra.mxu0 %v42_v41 }
  0x14   :  { %195 = vmatpush.msra.mxu3 %v37_v17  ;;  %175 = vmatpush.msra.mxu2 %v36_v18  ;;  %v48_v44 = vld [vmem:[#allocation3 + $0x70] sm:$0xff]  ;;  %v34_v45 = vld [vmem:[#allocation3] sm:$0xff]  ;;  %v35_v46 = vld [vmem:[#allocation3 + $0x8] sm:$0xff] }
  0x15   :  { %395 = vmatmul.msk.f32.vlgmr.msra.gmra.mxu3 %vm116_vm0, %v463_v22  ;;  %394 = vmatmul.msk.f32.vlgmr.msra.gmra.mxu2 %vm116_vm0, %v463_v22  ;;  %v41_v47 = vld [vmem:[#allocation3 + $0x38] sm:$0xff]  ;;  %v40_v48 = vld [vmem:[#allocation3 + $0x30] sm:$0xff]  ;;  %v94_v49 = vld [vmem:[#allocation3 + $0x1e0] sm:$0xff] }
  0x16   :  { %268 = vmatpush.msrb.mxu3 %v97_v20  ;;  %248 = vmatpush.msrb.mxu2 %v96_v21  ;;  %v95_v50 = vld [vmem:[#allocation3 + $0x1e8] sm:$0xff]  ;;  %v86_v51 = vld [vmem:[#allocation3 + $0x1a0] sm:$0xff]  ;;  %v98_v4 = vld [vmem:[%s508_s2] sm:$0xff] }
  0x17   :  { %154 = vmatpush.msra.mxu1 %v43_v42  ;;  %135 = vmatpush.msra.mxu0 %v34_v45  ;;  %v87_v52 = vld [vmem:[#allocation3 + $0x1a8] sm:$0xff]  ;;  %v78_v53 = vld [vmem:[#allocation3 + $0x160] sm:$0xff]  ;;  %v107_v5 = vperm.slane %v98_v4, 7  ;;  %v106_v6 = vperm.slane %v98_v4, 6  ;;  %v105_v20 = vperm.slane %v98_v4, 5  ;;  %v104_v25 = vperm.slane %v98_v4, 4 }
  0x18   :  { %269 = vmatpush.msrb.mxu3 %v89_v23  ;;  %249 = vmatpush.msrb.mxu2 %v88_v24  ;;  %v79_v54 = vld [vmem:[#allocation3 + $0x168] sm:$0xff]  ;;  %v70_v55 = vld [vmem:[#allocation3 + $0x120] sm:$0xff]  ;;  %v103_v37 = vperm.slane %v98_v4, 3  ;;  %v321_v41 = vld [vmem:[%s509_s3] sm:$0xff]  ;;  %v101_v42 = vperm.slane %v98_v4, 1 }
  0x19   :  { %155 = vmatpush.msra.mxu1 %v35_v46  ;;  %208 = vmatpush.msrb.mxu0 %v94_v49  ;;  %v71_v56 = vld [vmem:[#allocation3 + $0x128] sm:$0xff]  ;;  %v62_v57 = vld [vmem:[#allocation3 + $0xe0] sm:$0xff] }
  0x1a   :  { %270 = vmatpush.msrb.mxu3 %v81_v27  ;;  %250 = vmatpush.msrb.mxu2 %v80_v28  ;;  %v63_v58 = vld [vmem:[#allocation3 + $0xe8] sm:$0xff]  ;;  %v54_v59 = vld [vmem:[#allocation3 + $0xa0] sm:$0xff] }
  0x1b   :  { %228 = vmatpush.msrb.mxu1 %v95_v50  ;;  %392 = vmatmul.msk.f32.vlgmr.msra.gmra.mxu0 %vm116_vm0, %v463_v22  ;;  %v55_v60 = vld [vmem:[#allocation3 + $0xa8] sm:$0xff]  ;;  %v46_v61 = vld [vmem:[#allocation3 + $0x60] sm:$0xff] }
  0x1c   :  { %271 = vmatpush.msrb.mxu3 %v73_v31  ;;  %251 = vmatpush.msrb.mxu2 %v72_v32  ;;  %v47_v62 = vld [vmem:[#allocation3 + $0x68] sm:$0xff]  ;;  %v38_v63 = vld [vmem:[#allocation3 + $0x20] sm:$0xff] }
  0x1d   :  { %393 = vmatmul.msk.f32.vlgmr.msra.gmra.mxu1 %vm116_vm0, %v463_v22  ;;  %209 = vmatpush.msrb.mxu0 %v86_v51  ;;  %v39_v0 = vld [vmem:[#allocation3 + $0x28] sm:$0xff]  ;;  %v322_v1 = vld [vmem:[%s509_s3 + $0x8] sm:$0xff] }
  0x1e   :  { %272 = vmatpush.msrb.mxu3 %v65_v35  ;;  %252 = vmatpush.msrb.mxu2 %v64_v36  ;;  %327 = vst [vmem:[#allocation1 + $0x20] ss:$4 sm:$0xff] %v322_v1 }
  0x1f   :  { %229 = vmatpush.msrb.mxu1 %v87_v52  ;;  %210 = vmatpush.msrb.mxu0 %v78_v53 }
  0x20   :  { %273 = vmatpush.msrb.mxu3 %v57_v39  ;;  %253 = vmatpush.msrb.mxu2 %v56_v40  ;;  %v102_v39 = vperm.slane %v98_v4, 2  ;;  %v100_v40 = vperm.slane %v98_v4, 0 }
  0x21   :  { %230 = vmatpush.msrb.mxu1 %v79_v54  ;;  %211 = vmatpush.msrb.mxu0 %v70_v55 }
  0x22   :  { %274 = vmatpush.msrb.mxu3 %v49_v43  ;;  %254 = vmatpush.msrb.mxu2 %v48_v44 }
  0x23   :  { %231 = vmatpush.msrb.mxu1 %v71_v56  ;;  %212 = vmatpush.msrb.mxu0 %v62_v57 }
  0x24   :  { %275 = vmatpush.msrb.mxu3 %v41_v47  ;;  %255 = vmatpush.msrb.mxu2 %v40_v48 }
  0x25   :  { %399 = vmatmul.msk.f32.vlgmr.msrb.gmra.mxu3 %vm116_vm0, %v463_v22  ;;  %398 = vmatmul.msk.f32.vlgmr.msrb.gmra.mxu2 %vm116_vm0, %v463_v22  ;;  %v333_v28 = vld.sshfl [vmem:[#allocation1 + $0x28] sm:$0xff pattern:$0x73625140]  ;;  %v335_v33 = vld.sshfl [vmem:[#allocation1 + $0x38] sm:$0xff pattern:$0x73625140] }
  0x26   :  { %232 = vmatpush.msrb.mxu1 %v63_v58  ;;  %213 = vmatpush.msrb.mxu0 %v54_v59  ;;  %v334_v35 = vld.sshfl [vmem:[#allocation1 + $0x30] sm:$0xff pattern:$0x73625140]  ;;  %v332_v36 = vld.sshfl [vmem:[#allocation1 + $0x20] sm:$0xff pattern:$0x73625140] }
  0x28   :  { %233 = vmatpush.msrb.mxu1 %v55_v60  ;;  %214 = vmatpush.msrb.mxu0 %v46_v61 }
  0x2a   :  { %234 = vmatpush.msrb.mxu1 %v47_v62  ;;  %215 = vmatpush.msrb.mxu0 %v38_v63 }
  0x2b   :  { %396 = vmatmul.msk.f32.vlgmr.msrb.gmra.mxu0 %vm116_vm0, %v463_v22 }
  0x2c   :  { %235 = vmatpush.msrb.mxu1 %v39_v0 }
  0x2d   :  { %397 = vmatmul.msk.f32.vlgmr.msrb.gmra.mxu1 %vm116_vm0, %v463_v22 }
  0x98   :  { %v197_v2 = vpop.f32.mrf.mxu3  ;;  %v177_v3 = vpop.f32.mrf.mxu2 }
  0x99   :  { %v137_v19 = vpop.f32.mrf.mxu0  ;;  %v198_v48 = vadd.f32 %v197_v2, %v103_v37  ;;  %v178_v52 = vadd.f32 %v177_v3, %v102_v39 }
  0x9a   :  { %v157_v16 = vpop.f32.mrf.mxu1  ;;  %v138_v53 = vadd.f32 %v137_v19, %v100_v40 }
  0x9b   :  { %v158_v54 = vadd.f32 %v157_v16, %v101_v42  ;;  %v283_v61 = vmax.f32 %v198_v48, 0.0  ;;  %v282_v62 = vmax.f32 %v178_v52, 0.0 }
  0x9c   :  { %v280_v63 = vmax.f32 %v138_v53, 0.0 }
  0x9d   :  { %v281_v0 = vmax.f32 %v158_v54, 0.0 }
  0xa8   :  { %v277_v7 = vpop.f32.mrf.mxu3  ;;  %v257_v8 = vpop.f32.mrf.mxu2 }
  0xa9   :  { %v278_v9 = vadd.f32 %v277_v7, %v107_v5  ;;  %v258_v10 = vadd.f32 %v257_v8, %v106_v6  ;;  %v217_v26 = vpop.f32.mrf.mxu0 }
  0xaa   :  { %v237_v21 = vpop.f32.mrf.mxu1  ;;  %v218_v29 = vadd.f32 %v217_v26, %v104_v25 }
  0xab   :  { %v287_v11 = vmax.f32 %v278_v9, 0.0  ;;  %v286_v12 = vmax.f32 %v258_v10, 0.0  ;;  %v238_v24 = vadd.f32 %v237_v21, %v105_v20 }
  0xac   :  { %v284_v34 = vmax.f32 %v218_v29, 0.0 }
  0xad   :  { %v294_v13 = vrot.slane %v287_v11, 6  ;;  %v285_v27 = vmax.f32 %v238_v24, 0.0  ;;  %v351_v43 = vmul.f32 %v335_v33, %v287_v11  ;;  %v350_v44 = vmul.f32 %v334_v35, %v286_v12 }
  0xae   :  { %v348_v45 = vmul.f32 %v332_v36, %v284_v34 }
  0xaf   :  { %v296_v14 = vsel %vm295_vm1, %v286_v12, %v294_v13  ;;  %v349_v32 = vmul.f32 %v333_v28, %v285_v27 }
  0xb0   :  { %298 = vst [vmem:[#allocation2] sm:$0xf] %v296_v14 }
  0xb7   :  { %v299_v15 = vld [vmem:[#allocation2] sm:$0xf] }
  0xb8   :  { %301 = vst [vmem:[#allocation1] ss:$4 sm:$0xff] %v299_v15 }
  0xbf   :  { %v488_v17 = vld.sshfl [vmem:[#allocation1] sm:$0xff pattern:$0x73625140]  ;;  %v303_v18 = vld.sshfl [vmem:[#allocation1 + $0x8] sm:$0xff pattern:$0x73625140] }
  0xc0   :  { %306 = vst [vmem:[#allocation1] ss:$4 sm:$0xff] %v299_v15 }
  0xc7   :  { %v307_v22 = vld.sshfl [vmem:[#allocation1] sm:$0xff pattern:$0x73625140]  ;;  %v308_v23 = vld.sshfl [vmem:[#allocation1 + $0x8] sm:$0xff pattern:$0x73625140] }
  0xc8   :  { %311 = vst [vmem:[#allocation1] ss:$4 sm:$0xff] %v299_v15 }
  0xcf   :  { %v312_v30 = vld.sshfl [vmem:[#allocation1] sm:$0xff pattern:$0x73625140]  ;;  %v313_v31 = vld.sshfl [vmem:[#allocation1 + $0x8] sm:$0xff pattern:$0x73625140] }
  0xd0   :  { %316 = vst [vmem:[#allocation1] ss:$4 sm:$0xff] %v299_v15  ;;  %v357_v38 = vadd.f32 %v349_v32, %v313_v31  ;;  %v356_v57 = vadd.f32 %v348_v45, %v312_v30 }
  0xd2   :  { %v371_v51 = vrot.slane %v357_v38, 6 }
  0xd4   :  { %v380_v59 = vsel %vm295_vm1, %v356_v57, %v371_v51 }
  0xd7   :  { %v317_v46 = vld.sshfl [vmem:[#allocation1] sm:$0xff pattern:$0x73625140]  ;;  %v318_v47 = vld.sshfl [vmem:[#allocation1 + $0x8] sm:$0xff pattern:$0x73625140] }
  0xd8   :  { %v358_v49 = vadd.f32 %v350_v44, %v317_v46  ;;  %v359_v50 = vadd.f32 %v351_v43, %v318_v47  ;;  %325 = vst [vmem:[#allocation1] ss:$4 sm:$0xff] %v321_v41 }
  0xda   :  { %v372_v55 = vrot.slane %v358_v49, 4  ;;  %v373_v56 = vrot.slane %v359_v50, 2 }
  0xdc   :  { %v381_v58 = vsel %vm376_vm2, %v372_v55, %v373_v56 }
  0xdd   :  { %v382_v60 = vsel %vm378_vm3, %v380_v59, %v381_v58 }
  0xde   :  { %386 = vst [vmem:[%s510_s4 + $0x8] sm:$0xff] %v382_v60 }
  0xdf   :  { %v328_v1 = vld.sshfl [vmem:[#allocation1] sm:$0xff pattern:$0x73625140]  ;;  %v329_v2 = vld.sshfl [vmem:[#allocation1 + $0x8] sm:$0xff pattern:$0x73625140] }
  0xe0   :  { %v344_v3 = vmul.f32 %v328_v1, %v280_v63  ;;  %v330_v4 = vld.sshfl [vmem:[#allocation1 + $0x10] sm:$0xff pattern:$0x73625140]  ;;  %v331_v5 = vld.sshfl [vmem:[#allocation1 + $0x18] sm:$0xff pattern:$0x73625140]  ;;  %v345_v6 = vmul.f32 %v329_v2, %v281_v0 }
  0xe1   :  { %v346_v7 = vmul.f32 %v330_v4, %v282_v62  ;;  %v347_v8 = vmul.f32 %v331_v5, %v283_v61 }
  0xe2   :  { %v353_v9 = vadd.f32 %v345_v6, %v303_v18  ;;  %v352_v12 = vadd.f32 %v344_v3, %v488_v17 }
  0xe3   :  { %v354_v10 = vadd.f32 %v346_v7, %v307_v22  ;;  %v355_v11 = vadd.f32 %v347_v8, %v308_v23 }
  0xe4   :  { %v368_v13 = vrot.slane %v353_v9, 6 }
  0xe5   :  { %v369_v14 = vrot.slane %v354_v10, 4  ;;  %v370_v15 = vrot.slane %v355_v11, 2 }
  0xe6   :  { %v375_v16 = vsel %vm295_vm1, %v352_v12, %v368_v13 }
  0xe7   :  { %v377_v19 = vsel %vm376_vm2, %v369_v14, %v370_v15 }
  0xe8   :  { %v379_v20 = vsel %vm378_vm3, %v375_v16, %v377_v19 }
  0xe9   :  { %385 = vst [vmem:[%s510_s4] sm:$0xff] %v379_v20 }
  0xea   :  { %391 = vsyncpa [#allocation4], 1 }

</bundles_post_ra>
